<compile_context>
chip_gen: v6e
topology: v6e:2x2x1
jax: 0.10.0
libtpu: 0.0.40
codegen_flags: <defaults>
</compile_context>

<pallas_src>
import functools

import jax
import jax.numpy as jnp
from jax import lax
from jax.experimental import pallas as pl
from jax.experimental.pallas import tpu as pltpu


def _centered_axis_max(x, r, axis, local_idx, extent, neg):
    """Sliding max over offsets [-r, r] along `axis` of 2-D `x`.

    `local_idx` is a thin broadcastable index array ((rows, 1) for axis 0, (1, cols) for
    axis 1) holding each element's index within its own image along `axis`. Window positions
    outside [0, extent) contribute -inf (MaxPool2d's implicit padding; in the flattened
    layout this also blocks cross-image contamination). Shifts are pltpu.roll (XLU slot) plus
    a broadcast VPU select; the running max uses log-depth doubling with overlap.
    """
    if r <= 0:
        return x
    n = x.shape[axis]
    mask_cache = {}

    def shift_fwd(a, k):  # neighbour at +k along axis; -inf where it lies outside the image
        if k >= extent:
            return jnp.full_like(a, -jnp.inf)
        key = ("f", k)
        if key not in mask_cache:
            mask_cache[key] = local_idx < (extent - k)
        return jnp.where(mask_cache[key], pltpu.roll(a, (-k) % n, axis), neg)

    def shift_back(a, k):  # neighbour at -k along axis
        if k >= extent:
            return jnp.full_like(a, -jnp.inf)
        key = ("b", k)
        if key not in mask_cache:
            mask_cache[key] = local_idx >= k
        return jnp.where(mask_cache[key], pltpu.roll(a, k % n, axis), neg)

    # Forward running max over offsets 0..r (doubling with overlap).
    fwd = x
    cur = 1
    while cur < r + 1:
        step = min(cur, (r + 1) - cur)
        fwd = jnp.maximum(fwd, shift_fwd(fwd, step))
        cur += step

    # Backward running max over offsets -r..-1 (doubling with overlap).
    back = shift_back(x, 1)
    cur = 1
    while cur < r:
        step = min(cur, r - cur)
        back = jnp.maximum(back, shift_back(back, step))
        cur += step

    return jnp.maximum(fwd, back)


def _maxpool_kernel(x_ref, o_ref, *, r):
    b, H, W = x_ref.shape
    compute_dtype = jnp.float32 if jnp.dtype(x_ref.dtype).itemsize < 4 else x_ref.dtype
    neg = jnp.array(-jnp.inf, dtype=compute_dtype)

    # Flatten the batch block into the sublane axis. The wrapper only packs b > 1 images per
    # block when H % 8 == 0, so this reshape is a layout no-op (tile order is identical).
    x = x_ref[...].astype(compute_dtype).reshape(b * H, W)

    # Thin broadcastable masks: per-image row index as a (b*H, 1) column, column index as a
    # (1, W) row. jnp.where broadcasts them against the data; no full-block i32 arrays.
    row = lax.broadcasted_iota(jnp.int32, (b, H, 1), 1).reshape(b * H, 1)
    col = lax.broadcasted_iota(jnp.int32, (1, W), 1)

    v = _centered_axis_max(x, r, 0, row, H, neg)     # vertical (sublane) pass
    out = _centered_axis_max(v, r, 1, col, W, neg)   # horizontal (lane) pass
    o_ref[...] = out.reshape(b, H, W).astype(o_ref.dtype)


def _maxes_per_axis(r):
    """Number of jnp.maximum ops per axis in the doubling schedule (for the cost estimate)."""
    if r <= 0:
        return 0
    cnt, cur = 0, 1
    while cur < r + 1:
        cur += min(cur, (r + 1) - cur)
        cnt += 1
    cnt += 1  # back-chain init shift
    cur = 1
    while cur < r:
        cur += min(cur, r - cur)
        cnt += 1
    return cnt + 1  # final max(fwd, back)


def max_pool_nms(x: jax.Array, nms_radius: int) -> jax.Array:
    """Equivalent of MaxPool(nms_radius).forward(x) with x of shape (N, H, W)."""
    assert x.ndim == 3, "expected (N, H, W)"
    assert jnp.issubdtype(x.dtype, jnp.floating), "-inf max-pool padding needs a floating dtype"
    r = int(nms_radius)
    assert r >= 0
    if r == 0:  # kernel_size=1, stride=1 -> identity
        return x
    N, H, W = x.shape

    itemsize = jnp.dtype(x.dtype).itemsize
    compute_itemsize = max(itemsize, 4)          # in-kernel temporaries are f32 for 16-bit I/O
    plane_bytes = H * W * itemsize               # HBM / pipeline-buffer bytes per image
    plane_vmem = H * W * compute_itemsize        # in-kernel temporary bytes per image

    # Generation-aware VMEM budget (v5e/v6e: 128 MiB/TC, v7x: 64 MiB/TC).
    try:
        vmem_cap = int(getattr(pltpu.get_tpu_info(), "vmem_capacity_bytes", 64 << 20))
    except Exception:
        vmem_cap = 64 << 20
    if vmem_cap >= (96 << 20):
        block_cap = 8 << 20        # v5e/v6e: big blocks amortize ~0.35 us/step grid overhead
        vmem_ceiling = 96 << 20
    else:
        block_cap = 4 << 20        # v7x: budget against 64 MiB VMEM
        vmem_ceiling = 44 << 20

    # Pack images per grid step; keep >= 2 grid steps so ("parallel",) can use both v7x TCs
    # (harmless on 1-TC parts). Ragged last block is handled by per-image masks + write clip.
    b_tile = max(1, min(N, block_cap // max(plane_vmem, 1)))
    b_tile = min(b_tile, pl.cdiv(N, 2)) if N > 1 else 1
    if H % 8 != 0:
        # The in-kernel flatten is only layout-free when H is a sublane multiple.
        b_tile = 1
    grid = pl.cdiv(N, b_tile)
    # TODO(synk): for very large planes (single plane > block_cap) add halo'd H-strip tiling
    # (manual DMA of TILE_H + 2r row windows) instead of relying on a bigger VMEM limit.

    block_hbm = b_tile * plane_bytes
    block_vmem = b_tile * plane_vmem
    # 2x(in) + 2x(out) pipeline buffers + ~4-6 block-sized in-kernel temporaries + headroom.
    vmem_limit = int(min(max(4 * block_hbm + 6 * block_vmem + (2 << 20), 32 << 20), vmem_ceiling))

    cost = pl.CostEstimate(
        flops=4 * max(1, _maxes_per_axis(r)) * N * H * W,   # max + select per axis, 2 axes
        bytes_accessed=2 * N * H * W * itemsize,
        transcendentals=0,
    )

    kernel = functools.partial(_maxpool_kernel, r=r)
    return pl.pallas_call(
        kernel,
        out_shape=jax.ShapeDtypeStruct((N, H, W), x.dtype),
        grid_spec=pltpu.PrefetchScalarGridSpec(
            num_scalar_prefetch=0,
            grid=(grid,),
            in_specs=[pl.BlockSpec((b_tile, H, W), lambda i: (i, 0, 0))],
            # Perf contract: keep W a multiple of 128 (lane-dense unmasked stores). SuperPoint
            # heatmaps (W=640) already satisfy this; small-W test shapes run masked stores.
            out_specs=pl.BlockSpec((b_tile, H, W), lambda i: (i, 0, 0)),
        ),
        compiler_params=pltpu.CompilerParams(
            dimension_semantics=("parallel",),
            vmem_limit_bytes=vmem_limit,
        ),
        cost_estimate=cost,
    )(x)


def _reference_maxpool(x: jax.Array, nms_radius: int) -> jax.Array:
    K = 2 * nms_radius + 1
    return lax.reduce_window(
        x,
        jnp.array(-jnp.inf, x.dtype),
        lax.max,
        window_dimensions=(1, K, K),
        window_strides=(1, 1, 1),
        padding=((0, 0), (nms_radius, nms_radius), (nms_radius, nms_radius)),
    )


if __name__ == "__main__":
    key = jax.random.PRNGKey(0)

    cases = [
        ((2, 16, 16), 2, jnp.float32),    # module-spec small shape
        ((5, 16, 128), 1, jnp.float32),   # lane-dense W, ragged last grid block (N=5, b_tile=3)
        ((2, 13, 20), 2, jnp.float32),    # H not a sublane multiple -> 1 image per block
        ((3, 16, 128), 4, jnp.bfloat16),  # bf16 I/O, SuperPoint default radius
    ]
    for shape, r, dtype in cases:
        key, sub = jax.random.split(key)
        x = jax.random.normal(sub, shape, dtype=dtype)
        out = jax.block_until_ready(max_pool_nms(x, r))
        ref = _reference_maxpool(x, r)
        assert out.shape == shape and out.dtype == x.dtype
        assert jnp.allclose(out.astype(jnp.float32), ref.astype(jnp.float32)), (
            f"Pallas maxpool mismatch for shape={shape}, r={r}, dtype={dtype}"
        )

    print("KERNEL_OK")
</pallas_src>

<mosaic_0001>
module attributes {stable_mosaic.version = 11 : i64} {
  func.func @_maxpool_kernel(%arg0: i32, %arg1: memref<1x16x16xf32, #tpu.memory_space<vmem>>, %arg2: memref<1x16x16xf32, #tpu.memory_space<vmem>>) attributes {dimension_semantics = [#tpu.dimension_semantics<parallel>], iteration_bounds = array<i64: 2>, scalar_prefetch = 0 : i64, scratch_operands = 0 : i64, tpu.core_type = #tpu.core_type<tc>, window_params = [{transform_indices = @transform_0, window_bounds = array<i64: 1, 16, 16>}, {transform_indices = @transform_1, window_bounds = array<i64: 1, 16, 16>}]} {
    %c0 = arith.constant 0 : index
    %c0_0 = arith.constant 0 : index
    %c0_1 = arith.constant 0 : index
    %0 = vector.load %arg1[%c0, %c0_0, %c0_1] : memref<1x16x16xf32, #tpu.memory_space<vmem>>, vector<1x16x16xf32>
    %1 = vector.shape_cast %0 : vector<1x16x16xf32> to vector<16x16xf32>
    %2 = tpu.iota {dimensions = array<i32: 1>} : vector<1x16x1xi32>
    %3 = vector.shape_cast %2 : vector<1x16x1xi32> to vector<16x1xi32>
    %4 = tpu.iota {dimensions = array<i32: 1>} : vector<1x16xi32>
    %c15_i32 = arith.constant 15 : i32
    %5 = vector.broadcast %c15_i32 : i32 to vector<16x1xi32>
    %6 = arith.cmpi slt, %3, %5 : vector<16x1xi32>
    %c15_i32_2 = arith.constant 15 : i32
    %7 = tpu.dynamic_rotate %1 by %c15_i32_2 dim 0 : vector<16x16xf32>, i32 -> vector<16x16xf32>
    %cst = arith.constant 0xFF800000 : f32
    %8 = vector.shape_cast %6 : vector<16x1xi1> to vector<16x1xi1>
    %9 = vector.broadcast %8 : vector<16x1xi1> to vector<16x16xi1>
    %10 = vector.broadcast %cst : f32 to vector<16x16xf32>
    %11 = arith.select %9, %7, %10 : vector<16x16xi1>, vector<16x16xf32>
    %12 = arith.maximumf %1, %11 : vector<16x16xf32>
    %c15_i32_3 = arith.constant 15 : i32
    %13 = tpu.dynamic_rotate %12 by %c15_i32_3 dim 0 : vector<16x16xf32>, i32 -> vector<16x16xf32>
    %cst_4 = arith.constant 0xFF800000 : f32
    %14 = vector.shape_cast %6 : vector<16x1xi1> to vector<16x1xi1>
    %15 = vector.broadcast %14 : vector<16x1xi1> to vector<16x16xi1>
    %16 = vector.broadcast %cst_4 : f32 to vector<16x16xf32>
    %17 = arith.select %15, %13, %16 : vector<16x16xi1>, vector<16x16xf32>
    %18 = arith.maximumf %12, %17 : vector<16x16xf32>
    %c1_i32 = arith.constant 1 : i32
    %19 = vector.broadcast %c1_i32 : i32 to vector<16x1xi32>
    %20 = arith.cmpi sge, %3, %19 : vector<16x1xi32>
    %c1_i32_5 = arith.constant 1 : i32
    %21 = tpu.dynamic_rotate %1 by %c1_i32_5 dim 0 : vector<16x16xf32>, i32 -> vector<16x16xf32>
    %cst_6 = arith.constant 0xFF800000 : f32
    %22 = vector.shape_cast %20 : vector<16x1xi1> to vector<16x1xi1>
    %23 = vector.broadcast %22 : vector<16x1xi1> to vector<16x16xi1>
    %24 = vector.broadcast %cst_6 : f32 to vector<16x16xf32>
    %25 = arith.select %23, %21, %24 : vector<16x16xi1>, vector<16x16xf32>
    %c1_i32_7 = arith.constant 1 : i32
    %26 = tpu.dynamic_rotate %25 by %c1_i32_7 dim 0 : vector<16x16xf32>, i32 -> vector<16x16xf32>
    %cst_8 = arith.constant 0xFF800000 : f32
    %27 = vector.shape_cast %20 : vector<16x1xi1> to vector<16x1xi1>
    %28 = vector.broadcast %27 : vector<16x1xi1> to vector<16x16xi1>
    %29 = vector.broadcast %cst_8 : f32 to vector<16x16xf32>
    %30 = arith.select %28, %26, %29 : vector<16x16xi1>, vector<16x16xf32>
    %31 = arith.maximumf %25, %30 : vector<16x16xf32>
    %32 = arith.maximumf %18, %31 : vector<16x16xf32>
    %c15_i32_9 = arith.constant 15 : i32
    %33 = vector.broadcast %c15_i32_9 : i32 to vector<1x16xi32>
    %34 = arith.cmpi slt, %4, %33 : vector<1x16xi32>
    %c15_i32_10 = arith.constant 15 : i32
    %35 = tpu.dynamic_rotate %32 by %c15_i32_10 dim 1 : vector<16x16xf32>, i32 -> vector<16x16xf32>
    %cst_11 = arith.constant 0xFF800000 : f32
    %36 = vector.shape_cast %34 : vector<1x16xi1> to vector<1x16xi1>
    %37 = vector.broadcast %36 : vector<1x16xi1> to vector<16x16xi1>
    %38 = vector.broadcast %cst_11 : f32 to vector<16x16xf32>
    %39 = arith.select %37, %35, %38 : vector<16x16xi1>, vector<16x16xf32>
    %40 = arith.maximumf %32, %39 : vector<16x16xf32>
    %c15_i32_12 = arith.constant 15 : i32
    %41 = tpu.dynamic_rotate %40 by %c15_i32_12 dim 1 : vector<16x16xf32>, i32 -> vector<16x16xf32>
    %cst_13 = arith.constant 0xFF800000 : f32
    %42 = vector.shape_cast %34 : vector<1x16xi1> to vector<1x16xi1>
    %43 = vector.broadcast %42 : vector<1x16xi1> to vector<16x16xi1>
    %44 = vector.broadcast %cst_13 : f32 to vector<16x16xf32>
    %45 = arith.select %43, %41, %44 : vector<16x16xi1>, vector<16x16xf32>
    %46 = arith.maximumf %40, %45 : vector<16x16xf32>
    %c1_i32_14 = arith.constant 1 : i32
    %47 = vector.broadcast %c1_i32_14 : i32 to vector<1x16xi32>
    %48 = arith.cmpi sge, %4, %47 : vector<1x16xi32>
    %c1_i32_15 = arith.constant 1 : i32
    %49 = tpu.dynamic_rotate %32 by %c1_i32_15 dim 1 : vector<16x16xf32>, i32 -> vector<16x16xf32>
    %cst_16 = arith.constant 0xFF800000 : f32
    %50 = vector.shape_cast %48 : vector<1x16xi1> to vector<1x16xi1>
    %51 = vector.broadcast %50 : vector<1x16xi1> to vector<16x16xi1>
    %52 = vector.broadcast %cst_16 : f32 to vector<16x16xf32>
    %53 = arith.select %51, %49, %52 : vector<16x16xi1>, vector<16x16xf32>
    %c1_i32_17 = arith.constant 1 : i32
    %54 = tpu.dynamic_rotate %53 by %c1_i32_17 dim 1 : vector<16x16xf32>, i32 -> vector<16x16xf32>
    %cst_18 = arith.constant 0xFF800000 : f32
    %55 = vector.shape_cast %48 : vector<1x16xi1> to vector<1x16xi1>
    %56 = vector.broadcast %55 : vector<1x16xi1> to vector<16x16xi1>
    %57 = vector.broadcast %cst_18 : f32 to vector<16x16xf32>
    %58 = arith.select %56, %54, %57 : vector<16x16xi1>, vector<16x16xf32>
    %59 = arith.maximumf %53, %58 : vector<16x16xf32>
    %60 = arith.maximumf %46, %59 : vector<16x16xf32>
    %61 = vector.shape_cast %60 : vector<16x16xf32> to vector<1x16x16xf32>
    %c0_19 = arith.constant 0 : index
    %c0_20 = arith.constant 0 : index
    %c0_21 = arith.constant 0 : index
    %62 = vector.load %arg2[%c0_19, %c0_20, %c0_21] : memref<1x16x16xf32, #tpu.memory_space<vmem>>, vector<1x16x16xf32>
    tpu.vector_store %arg2[%c0_19, %c0_20, %c0_21], %61 {strides = array<i32>} : memref<1x16x16xf32, #tpu.memory_space<vmem>>, vector<1x16x16xf32>,
    return
  }
  func.func @transform_0(%arg0: i32) -> (i32, i32, i32) {
    %c0_i32 = arith.constant 0 : i32
    %c0_i32_0 = arith.constant 0 : i32
    %c0_i32_1 = arith.constant 0 : i32
    return %arg0, %c0_i32, %c0_i32_0 : i32, i32, i32
  }
  func.func @transform_1(%arg0: i32) -> (i32, i32, i32) {
    %c0_i32 = arith.constant 0 : i32
    %c0_i32_0 = arith.constant 0 : i32
    %c0_i32_1 = arith.constant 0 : i32
    return %arg0, %c0_i32, %c0_i32_0 : i32, i32, i32
  }
}

</mosaic_0001>

<bundles_post_ra>
// kernel: tpu_custom_call.1
= control target key start
LH: loop header
LB: loop body
LE: loop exit
PB: predicated region body
PF: predicated region fallthrough
CT: control target
= control target key end

     0   :  { %6 = vsyncpa [#allocation3], 0  ;;  %s759_s0 = inlined_call_operand.hbm [shape: f32[2,16,16], index: 0, kind: input, shape index: {}]   ;;  %s760_s1 = inlined_call_operand.hbm [shape: f32[2,16,16], index: 1, kind: output, shape index: {}]  }
   0x1   :  { %8 = vsyncpa [#allocation3 + $0x1], 0 }
   0x2   :  { %9 = vsyncpa [#allocation4], 0 }
   0x3   :  { %11 = vsyncpa [#allocation4 + $0x1], 0  ;;  %s549_s6 = smov 0   ;;  %s551_s7 = smov 0  }
   0x4   :  { %s553_s8 = smov 0   ;;  %s555_s9 = smov 0  }
   0x5 LB: > { %s570_s10 = sadd.s32 4294967295, %s528_s9   ;;  %s367_s11 = sadd.s32 4294967294, %s528_s9   ;;  %s528_s9 = sphi %s555_s9, %s775_s9   ;;  %s524_s8 = sphi %s553_s8, %s774_s8   ;;  %s520_s7 = sphi %s551_s7, %s773_s7   ;;  %s516_s6 = sphi %s549_s6, %s772_s6  }
   0x6   : > { %s574_s12 = sadd.s32 1, %s528_s9   ;;  %s24_s13 = sadd.s32 1, %s524_s8 }
   0x7   : > { %s21_s14 = ssub.s32 %s528_s9, %s574_s12  ;;  %p31_p0 = scmp.ne.s32.totalorder %s524_s8, %s520_s7 }
   0x8   : > { %p22_p1 = scmp.eq.s32.totalorder %s21_s14, 0  ;;  %p32_p2 = scmp.eq.s32.totalorder %s528_s9, 0 }
   0x9   : > { %p37_p3 = scmp.ne.s32.totalorder %s520_s7, %s516_s6  ;;  %p38_p4 = scmp.eq.s32.totalorder %s570_s10, 0 }
   0xa   : > { %s586_s15 = scalar_select %p22_p1, %s524_s8, %s24_s13  }
   0xb   : > { %p588_p5 = por %p32_p2, %p31_p0  ;;  %p592_p6 = por %p38_p4, %p37_p3 }
   0xc   : > { %p61_p7 = scmp.eq.s32.totalorder %s570_s10, 1  ;;  %p67_p8 = scmp.eq.s32.totalorder %s367_s11, 1 }
   0xd   : > { %s764_s17 = scalar_select %p592_p6, 1, 0 }
   0xe   : > { %p395_p10 = scmp.lt.s32.totalorder %s528_s9, 2  ;;  %p599_p11 = por %p61_p7, %p31_p0 }
   0xf   : > { %p603_p12 = por %p67_p8, %p37_p3  ;;  %s87_s20 = sand.u32 1, %s524_s8  }
  0x10   : > { %s765_s18 = scalar_select %p599_p11, 1, 0 }
  0x11   : > { %s766_s19 = scalar_select %p603_p12, 1, 0 }
  0x12   : > { %s381_s21 = sshll.u32 %s528_s9, 8  ;;  %s370_s22 = sshll.u32 %s87_s20, 4 }
  0x13   : > { %s612_s25 = scalar_lea.hbm %s759_s0, %s381_s21  ;;  %s91_s26 = scalar_lea.vmem [#allocation2], %s370_s22 }
  0x14   : > { %s98_s27 = sshll.u32 %s91_s26, 4  ;;  %p616_p13 = pnand %p395_p10, %p588_p5  ;;  %s620_s27 = int_to_ptr.vmem [resolvable:$true] %s98_s27 }
  0x15   : > { %s622_s29 = scalar_lea.sflag [#allocation3], %s87_s20  ;;  %s436_s30 = scalar_lea.hbm %s612_s25, 256 }
  0x16   : > { %p437_p0 = scmp.ne.s32.totalorder %s612_s25, %s436_s30  ;;  %p438_p1 = pneg %p616_p13 }
  0x17   : > { %s441_s4 = scalar_lea.hbm %s759_s0, 512  ;;  %p442_p4 = scmp.lt.s32.totalorder %s612_s25, %s759_s0 }
  0x18   : > { %p439_p2 = pnand %p438_p1, %p437_p0  ;;  %p443_p5 = scmp.lt.s32.totalorder %s441_s4, %s436_s30 }
  0x1a   : > { %p440_p3 = pneg %p439_p2  ;;  %p444_p7 = por %p443_p5, %p442_p4 }
  0x1c   : > { %p445_p8 = pnand %p444_p7, %p440_p3 }
  0x1e   : > { %448 = shalt.err (!%p445_p8)
}
  0x1f   : > { %s449_s13 = scalar_lea.vmem %s620_s27, 256  ;;  %s530_s14 = smov [#allocation2]  }
  0x20   : > { %p450_p10 = scmp.ne.s32.totalorder %s620_s27, %s449_s13  ;;  %s454_s16 = sshll.u32 %s530_s14, 4  ;;  %s455_s16 = int_to_ptr.vmem [resolvable:$false] %s454_s16 }
  0x21   : > { %s456_s20 = scalar_lea.vmem %s455_s16, 512  ;;  %p457_p2 = scmp.lt.s32.totalorder %s620_s27, %s455_s16 }
  0x22   : > { %p452_p9 = pnand %p450_p10, %p438_p1  ;;  %p458_p12 = scmp.lt.s32.totalorder %s456_s20, %s449_s13 }
  0x24   : > { %p453_p0 = pneg %p452_p9  ;;  %p459_p11 = por %p458_p12, %p457_p2 }
  0x26   : > { %p460_p6 = pnand %p459_p11, %p453_p0 }
  0x28   : > { %463 = shalt.err (!%p460_p6)
}
  0x29   : > { %s531_s21 = smov 128   ;;  %s532_s22 = smov 8  }
  0x2a   : > { %390 = dma.hbm_to_vmem [thread:$0]  (!%p616_p13), %s612_s25, 256, %s620_s27, %s622_s29, %s531_s21, %s531_s21, %s532_s22  }
  0x2b   : > { %p373_p9 = scmp.ge.s32.totalorder %s528_s9, 1  ;;  %p106_p1 = scmp.lt.s32.totalorder %s528_s9, 3 }
  0x2d   : > { %p107_p3 = pnand %p373_p9, %p106_p1 }
  0x2e   : > { %s646_s23 = sand.u32 (!%p107_p3), 1, %s520_s7   ;;  %p768_p6 = scmp.ne.s32.totalorder (!%p107_p3), %s764_s17, 0 }
  0x2f   : > { %110 = sbr.rel (%p107_p3) target bundleno = 794 (0x31a), region = 24  ;;  %s374_s24 = sshll.u32 (!%p107_p3), %s646_s23, 4 }
  0x30   : > { %s113_s26 = scalar_lea.sflag (!%p107_p3), [#allocation3], %s646_s23  ;;  %s116_s30 = scalar_lea.vmem (!%p107_p3), [#allocation2], %s374_s24 }
  0x34   : > { %507 = dma.done.wait (%p768_p6), %s113_s26, 256  }
  0x35   : > { %509 = vsyncadd (%p768_p6), %s113_s26, 4294967040  ;;  %v137_v0 = vlaneseq  ;;  %v135_v3 = vld [vmem:[%s116_s30] sm:$0xff]  ;;  %v136_v4 = vld [vmem:[%s116_s30 + $0x8] sm:$0xff]  ;;  %s533_s17 = smov 16   ;;  %vm189_vm4 = vcmask 1047680   ;;  %s534_s25 = smov 127  }
  0x36   : > { %v144_v5 = vrot.slane %v135_v3, 1  ;;  %v145_v6 = vrot.slane %v136_v4, 1  ;;  %v167_v7 = vrot.slane %v135_v3, 7  ;;  %v168_v8 = vrot.slane %v136_v4, 7  ;;  %s535_s27 = smov 113   ;;  %s382_s28 = sshll.u32 %s570_s10, 8 }
  0x37   : > { %v138_v1 = vshrl.u32 %v137_v0, 7  ;;  %v141_v41 = vand.u32 127, %v137_v0  ;;  %vm277_vm7 = vcmask 130048   ;;  %s134_s29 = scalar_lea.vmem [#allocation5], %s374_s24  ;;  %s714_s5 = scalar_lea.hbm %s760_s1, %s382_s28 }
  0x38   : > { %s294_s2 = sshll.u32 %s134_s29, 4  ;;  %s281_s10 = scalar_lea.sflag [#allocation4], %s646_s23  ;;  %s716_s2 = int_to_ptr.vmem [resolvable:$true] %s294_s2 }
  0x39   : > { %v139_v2 = vadd.s32 8, %v138_v1  ;;  %vm146_vm1 = vcmp.lt.s32.totalorder %v138_v1, 7  ;;  %vm165_vm2 = vcmp.ge.s32.totalorder %v138_v1, 1  ;;  %vm169_vm3 = vcmp.lt.s32.totalorder %v138_v1, 1  ;;  %s464_s11 = scalar_lea.vmem %s716_s2, 256  ;;  %p769_p12 = scmp.ne.s32.totalorder %s765_s18, 0 }
  0x3a   : > { %v147_v9 = vsel %vm146_vm1, %v144_v5, %v145_v6  ;;  %v148_v10 = vsel %vm146_vm1, %v145_v6, %v144_v5  ;;  %v170_v11 = vsel %vm169_vm3, %v167_v7, %v168_v8  ;;  %v171_v12 = vsel %vm169_vm3, %v168_v8, %v167_v7  ;;  %p465_p11 = scmp.ne.s32.totalorder %s716_s2, %s464_s11  ;;  %s536_s13 = smov [#allocation5]  }
  0x3b   : > { %vm143_vm0 = vcmp.lt.s32.totalorder %v139_v2, 15  ;;  %v155_v14 = vmax.f32 %v135_v3, %v147_v9  ;;  %v176_v15 = vsel %vm165_vm2, %v171_v12, -inf  ;;  %v179_v16 = vrot.slane %v170_v11, 7  ;;  %s468_s14 = sshll.u32 %s536_s13, 4  ;;  %s469_s14 = int_to_ptr.vmem [resolvable:$false] %s468_s14 }
  0x3c   : > { %v154_v13 = vsel %vm143_vm0, %v148_v10, -inf  ;;  %v178_v18 = vrot.slane %v176_v15, 7  ;;  %vm188_vm5 = vcmp.lt.s32.totalorder %v141_v41, 15  ;;  %vm240_vm6 = vcmp.ge.s32.totalorder %v141_v41, 1  ;;  %p466_p13 = pnand %p465_p11, %p769_p12  ;;  %s470_s16 = scalar_lea.vmem %s469_s14, 512 }
  0x3d   : > { %v156_v17 = vmax.f32 %v136_v4, %v154_v13  ;;  %v157_v19 = vrot.slane %v155_v14, 1  ;;  %p471_p5 = scmp.lt.s32.totalorder %s716_s2, %s469_s14  ;;  %p472_p7 = scmp.lt.s32.totalorder %s470_s16, %s464_s11 }
  0x3e   : > { %v181_v21 = vsel %vm169_vm3, %v179_v16, %v178_v18  ;;  %v180_v22 = vsel %vm169_vm3, %v178_v18, %v179_v16  ;;  %p467_p4 = pneg %p466_p13 }
  0x3f   : > { %v158_v20 = vrot.slane %v156_v17, 1  ;;  %v182_v23 = vsel %vm165_vm2, %v181_v21, -inf  ;;  %v185_v29 = vmax.f32 %v170_v11, %v180_v22  ;;  %p473_p8 = por %p472_p7, %p471_p5 }
  0x40   : > { %v184_v25 = vmax.f32 %v176_v15, %v182_v23 }
  0x41   : > { %v159_v24 = vsel %vm146_vm1, %v157_v19, %v158_v20  ;;  %v160_v26 = vsel %vm146_vm1, %v158_v20, %v157_v19  ;;  %p474_p10 = pnand %p473_p8, %p467_p4 }
  0x42   : > { %v163_v27 = vmax.f32 %v155_v14, %v159_v24  ;;  %v162_v28 = vsel %vm143_vm0, %v160_v26, -inf }
  0x43   : > { %v164_v30 = vmax.f32 %v156_v17, %v162_v28 }
  0x44   : > { %v186_v31 = vmax.f32 %v163_v27, %v184_v25 }
  0x45   : > { %v187_v32 = vmax.f32 %v164_v30, %v185_v29 }
  0x46   : > { %190 = vrot.lane.b32.xlu0 %v186_v31, %s533_s17 }
  0x4a   : > { %193 = vrot.lane.b32.xlu0 %v187_v32, %s533_s17 }
  0xb8   : > { %v191_v33 = vpop.permute.xlu0 %190 }
  0xb9   : > { %v192_v34 = vsel %vm189_vm4, %v191_v33, %v186_v31 }
  0xba   : > { %196 = vrot.lane.b32.xlu1 %v192_v34, %s533_s17 }
  0xbc   : > { %v194_v35 = vpop.permute.xlu0 %193 }
  0xbd   : > { %v195_v36 = vsel %vm189_vm4, %v194_v35, %v187_v32 }
  0xbe   : > { %198 = vrot.lane.b32.xlu1 %v195_v36, %s533_s17 }
 0x12c   : > { %v197_v37 = vpop.permute.xlu1 %196 }
 0x12d   : > { %v200_v38 = vsel %vm189_vm4, %v197_v37, %v186_v31 }
 0x12e   : > { %206 = vrot.lane.b32.xlu0 %v200_v38, %s534_s25 }
 0x130   : > { %v199_v39 = vpop.permute.xlu1 %198 }
 0x131   : > { %v201_v40 = vsel %vm189_vm4, %v199_v39, %v187_v32 }
 0x132   : > { %243 = vrot.lane.b32.xlu0 %v200_v38, %s535_s27  ;;  %208 = vrot.lane.b32.xlu1 %v201_v40, %s534_s25 }
 0x136   : > { %245 = vrot.lane.b32.xlu1 %v201_v40, %s535_s27 }
 0x1a0   : > { %v207_v42 = vpop.permute.xlu0 %206 }
 0x1a1   : > { %v212_v43 = vsel %vm188_vm5, %v207_v42, -inf }
 0x1a2   : > { %v214_v44 = vmax.f32 %v186_v31, %v212_v43 }
 0x1a4   : > { %v209_v45 = vpop.permute.xlu1 %208  ;;  %216 = vrot.lane.b32.xlu0 %v214_v44, %s533_s17  ;;  %v244_v46 = vpop.permute.xlu0 %243 }
 0x1a5   : > { %v213_v47 = vsel %vm188_vm5, %v209_v45, -inf  ;;  %v249_v49 = vsel %vm240_vm6, %v244_v46, -inf }
 0x1a6   : > { %v215_v48 = vmax.f32 %v187_v32, %v213_v47 }
 0x1a8   : > { %219 = vrot.lane.b32.xlu1 %v215_v48, %s533_s17  ;;  %v246_v50 = vpop.permute.xlu1 %245  ;;  %251 = vrot.lane.b32.xlu0 %v249_v49, %s533_s17 }
 0x1a9   : > { %v250_v51 = vsel %vm240_vm6, %v246_v50, -inf }
 0x1ac   : > { %254 = vrot.lane.b32.xlu1 %v250_v51, %s533_s17 }
 0x216   : > { %v217_v52 = vpop.permute.xlu0 %216 }
 0x217   : > { %v218_v53 = vsel %vm189_vm4, %v217_v52, %v214_v44 }
 0x218   : > { %222 = vrot.lane.b32.xlu0 %v218_v53, %s533_s17 }
 0x21a   : > { %v220_v54 = vpop.permute.xlu1 %219  ;;  %v252_v55 = vpop.permute.xlu0 %251 }
 0x21b   : > { %v221_v56 = vsel %vm189_vm4, %v220_v54, %v215_v48  ;;  %v253_v57 = vsel %vm189_vm4, %v252_v55, %v249_v49 }
 0x21c   : > { %224 = vrot.lane.b32.xlu1 %v221_v56, %s533_s17  ;;  %257 = vrot.lane.b32.xlu0 %v253_v57, %s533_s17 }
 0x21e   : > { %v255_v58 = vpop.permute.xlu1 %254 }
 0x21f   : > { %v256_v59 = vsel %vm189_vm4, %v255_v58, %v250_v51 }
 0x220   : > { %259 = vrot.lane.b32.xlu1 %v256_v59, %s533_s17 }
 0x28a   : > { %v223_v60 = vpop.permute.xlu0 %222 }
 0x28b   : > { %v226_v61 = vsel %vm189_vm4, %v223_v60, %v214_v44 }
 0x28c   : > { %230 = vrot.lane.b32.xlu0 %v226_v61, %s534_s25 }
 0x28e   : > { %v225_v62 = vpop.permute.xlu1 %224  ;;  %v258_v63 = vpop.permute.xlu0 %257 }
 0x28f   : > { %v227_v0 = vsel %vm189_vm4, %v225_v62, %v215_v48  ;;  %v261_v1 = vsel %vm189_vm4, %v258_v63, %v249_v49 }
 0x290   : > { %232 = vrot.lane.b32.xlu1 %v227_v0, %s534_s25  ;;  %265 = vrot.lane.b32.xlu0 %v261_v1, %s535_s27 }
 0x292   : > { %v260_v2 = vpop.permute.xlu1 %259 }
 0x293   : > { %v262_v3 = vsel %vm189_vm4, %v260_v2, %v250_v51 }
 0x294   : > { %267 = vrot.lane.b32.xlu1 %v262_v3, %s535_s27 }
 0x2fe   : > { %v231_v4 = vpop.permute.xlu0 %230 }
 0x2ff   : > { %v236_v5 = vsel %vm188_vm5, %v231_v4, -inf }
 0x300   : > { %v238_v9 = vmax.f32 %v214_v44, %v236_v5 }
 0x302   : > { %v233_v6 = vpop.permute.xlu1 %232  ;;  %v266_v7 = vpop.permute.xlu0 %265 }
 0x303   : > { %v271_v8 = vsel %vm240_vm6, %v266_v7, -inf  ;;  %v237_v11 = vsel %vm188_vm5, %v233_v6, -inf }
 0x304   : > { %v273_v10 = vmax.f32 %v249_v49, %v271_v8  ;;  %v239_v15 = vmax.f32 %v215_v48, %v237_v11 }
 0x306   : > { %v275_v12 = vmax.f32 %v238_v9, %v273_v10  ;;  %v268_v13 = vpop.permute.xlu1 %267 }
 0x307   : > { %v272_v14 = vsel %vm240_vm6, %v268_v13, -inf }
 0x308   : > { %278 = vst.msk [vmem:[%s134_s29] sm:$0xff] %vm277_vm7, %v275_v12  ;;  %v274_v16 = vmax.f32 %v250_v51, %v272_v14 }
 0x30a   : > { %v276_v17 = vmax.f32 %v239_v15, %v274_v16 }
 0x30c   : > { %279 = vst.msk [vmem:[%s134_s29 + $0x8] sm:$0xff] %vm277_vm7, %v276_v17 }
 0x30d   : > { %477 = shalt.err (!%p474_p10)
}
 0x30e   : > { %s478_s20 = scalar_lea.hbm %s714_s5, 256  ;;  %s482_s24 = scalar_lea.hbm %s760_s1, 512 }
 0x30f   : > { %p479_p0 = scmp.ne.s32.totalorder %s714_s5, %s478_s20  ;;  %p483_p1 = scmp.lt.s32.totalorder %s714_s5, %s760_s1 }
 0x310   : > { %p484_p3 = scmp.lt.s32.totalorder %s482_s24, %s478_s20 }
 0x311   : > { %p480_p2 = pnand %p479_p0, %p769_p12 }
 0x312   : > { %p485_p6 = por %p484_p3, %p483_p1 }
 0x313   : > { %p481_p9 = pneg %p480_p2 }
 0x315   : > { %p486_p11 = pnand %p485_p6, %p481_p9 }
 0x317   : > { %489 = shalt.err (!%p486_p11)
}
 0x318   : > { %s537_s17 = smov 128   ;;  %s538_s25 = smov 8  }
 0x319   : > { %385 = dma.vmem_to_hbm [thread:$0]  (%p769_p12), %s716_s2, 256, %s714_s5, %s281_s10, %s537_s17, %s537_s17, %s538_s25  }
 0x31a PF: > { %s309_s27 = sand.u32 1, %s516_s6   ;;  %p770_p13 = scmp.ne.s32.totalorder %s766_s19, 0 }
 0x31b   : > { %p771_p4 = scmp.ge.s32.totalorder %s528_s9, 2  ;;  %s310_s28 = scalar_lea.sflag [#allocation4], %s309_s27 }
 0x31d   : > { %p392_p5 = pnand %p771_p4, %p770_p13 }
 0x31f   : > { %p393_p7 = pneg %p392_p5 }
 0x321   : > { %511 = dma.done.wait (%p393_p7), %s310_s28, 256  }
 0x322   : > { %513 = vsyncadd (%p393_p7), %s310_s28, 4294967040  ;;  %p14_p8 = scmp.ge.s32.totalorder %s574_s12, 4   ;;  %s772_s6 = smov %s520_s7 }
 0x323   : > { %s773_s7 = smov %s524_s8  ;;  %s774_s8 = smov %s586_s15 }
 0x324   : > { %s775_s9 = smov %s574_s12  ;;  %16 = sbr.rel (!%p14_p8) target bundleno = 5 (0x5), region = 69 }
 0x329   :  { %315 = vsyncpa [#allocation3], 1 }
 0x32a   :  { %317 = vsyncpa [#allocation3 + $0x1], 1 }
 0x32b   :  { %318 = vsyncpa [#allocation4], 1 }
 0x32c   :  { %320 = vsyncpa [#allocation4 + $0x1], 1 }

</bundles_post_ra>
